<compile_context>
chip_gen: v7x
topology: tpu7x:2x2x1
jax: 0.10.0
libtpu: 0.0.40
codegen_flags: <defaults>
</compile_context>

<pallas_src>
import jax
import jax.numpy as jnp
from jax.experimental import pallas as pl
from jax.experimental.pallas import tpu as pltpu


_LANE = 128
_SUBLANE = 8
# VMEM budget (bytes) for the pipelined x/out buffers; conservative enough to
# fit every generation (v7x has only 64 MiB physical VMEM).
_PIPELINE_VMEM_BUDGET = 20 * 1024 * 1024
_VMEM_LIMIT_BYTES = 48 * 1024 * 1024


def _conv1x1_kernel(x_ref, w_ref, b_ref, o_ref):
    # x_ref: (tm, C), w_ref: (C, Npad), b_ref: (1, Npad), o_ref: (tm, Npad)
    acc = jnp.dot(x_ref[...], w_ref[...], preferred_element_type=jnp.float32)
    o_ref[...] = (acc + b_ref[...]).astype(o_ref.dtype)


def _round_up(x, m):
    return ((x + m - 1) // m) * m


def _choose_tm(M, channels, n_pad, x_itemsize, out_itemsize):
    """Pick a sublane-aligned row tile that fits the pipeline VMEM budget."""
    # Per row of tile: double-buffered x block + double-buffered out block.
    per_row = 2 * channels * x_itemsize + 2 * n_pad * out_itemsize
    tm_cap = max(_SUBLANE, (_PIPELINE_VMEM_BUDGET // per_row) // _SUBLANE * _SUBLANE)
    tm = min(1024, tm_cap, _round_up(M, _SUBLANE))
    # Keep at least 2 grid steps when M allows, so v7x's two TensorCores both
    # get work (dimension_semantics=("parallel",) shards the grid across TCs).
    if _SUBLANE < M <= tm:
        tm = _round_up((M + 1) // 2, _SUBLANE)
    return tm


def linear_classifier_forward(embeddings, weight, bias, *, patch_h, patch_w):
    """Forward pass of LinearClassifier.

    Args:
      embeddings: any shape that reshapes to (-1, patch_h, patch_w, channels),
                  e.g. (B, patch_h*patch_w, channels).
      weight:     Conv2d weight of shape (n_classes, channels, 1, 1).
      bias:       Conv2d bias of shape (n_classes,).

    Returns:
      (B, n_classes, patch_h, patch_w) — identical to the PyTorch module.
    """
    n_classes, channels = weight.shape[0], weight.shape[1]

    x = embeddings.reshape(-1, patch_h, patch_w, channels)  # NHWC
    B = x.shape[0]
    M = B * patch_h * patch_w

    x2 = x.reshape(M, channels)                      # (M, C)
    w2 = weight.reshape(n_classes, channels).T       # (C, N)
    b2 = bias.reshape(1, n_classes)                  # (1, N)

    # --- Pad lane (N) dim to a multiple of 128 for lane-dense stores. ---
    n_pad = _round_up(n_classes, _LANE)
    if n_pad != n_classes:
        w2 = jnp.pad(w2, ((0, 0), (0, n_pad - n_classes)))
        b2 = jnp.pad(b2, ((0, 0), (0, n_pad - n_classes)))

    # --- Choose row tile & pad M so every block is full-sized. ---
    out_dtype = embeddings.dtype
    tm = _choose_tm(M, channels, n_pad,
                    jnp.dtype(x2.dtype).itemsize, jnp.dtype(out_dtype).itemsize)
    m_pad = _round_up(M, tm)
    if m_pad != M:
        x2 = jnp.pad(x2, ((0, m_pad - M), (0, 0)))

    grid = (m_pad // tm,)

    out_flat = pl.pallas_call(
        _conv1x1_kernel,
        out_shape=jax.ShapeDtypeStruct((m_pad, n_pad), out_dtype),
        grid_spec=pltpu.PrefetchScalarGridSpec(
            num_scalar_prefetch=0,
            grid=grid,
            in_specs=[
                pl.BlockSpec((tm, channels), lambda i: (i, 0)),
                # Weight / bias are grid-invariant: single buffer is enough.
                pl.BlockSpec((channels, n_pad), lambda i: (0, 0),
                             pipeline_mode=pl.Buffered(buffer_count=1)),
                pl.BlockSpec((1, n_pad), lambda i: (0, 0),
                             pipeline_mode=pl.Buffered(buffer_count=1)),
            ],
            out_specs=pl.BlockSpec((tm, n_pad), lambda i: (i, 0)),
        ),
        compiler_params=pltpu.CompilerParams(
            dimension_semantics=("parallel",),
            vmem_limit_bytes=_VMEM_LIMIT_BYTES,
        ),
    )(x2, w2, b2)

    # Slice padding off BEFORE the NCHW transpose so the epilogue transpose is
    # proportional to the real output size.
    out_flat = out_flat[:M, :n_classes]
    out = out_flat.reshape(B, patch_h, patch_w, n_classes)
    return jnp.transpose(out, (0, 3, 1, 2))


if __name__ == "__main__":
    # Small, forward-consistent shapes.
    batch = 2
    channels = 32
    patch_h = 8
    patch_w = 8
    n_classes = 16

    key = jax.random.PRNGKey(0)
    k_x, k_w, k_b = jax.random.split(key, 3)

    # embeddings as they'd come from the encoder: (B, H*W, C)
    embeddings = jax.random.normal(
        k_x, (batch, patch_h * patch_w, channels), dtype=jnp.float32
    )

    # Deterministic Conv2d(channels, n_classes, (1,1)) params (synthetic init).
    fan_in = channels  # * 1 * 1
    bound = 1.0 / (fan_in ** 0.5)
    weight = jax.random.uniform(
        k_w, (n_classes, channels, 1, 1), minval=-bound, maxval=bound,
        dtype=jnp.float32,
    )
    bias = jax.random.uniform(
        k_b, (n_classes,), minval=-bound, maxval=bound, dtype=jnp.float32
    )

    out = linear_classifier_forward(
        embeddings, weight, bias, patch_h=patch_h, patch_w=patch_w
    )
    out = jax.block_until_ready(out)

    # Reference check in plain JAX (same math as PyTorch 1x1 conv).
    ref = jnp.einsum(
        "bhwc,nc->bnhw",
        embeddings.reshape(-1, patch_h, patch_w, channels),
        weight.reshape(n_classes, channels),
    ) + bias[None, :, None, None]

    assert out.shape == (batch, n_classes, patch_h, patch_w), out.shape
    assert jnp.allclose(out, ref, atol=1e-5, rtol=1e-5)

    print("KERNEL_OK")
</pallas_src>

<mosaic_0001>
module attributes {stable_mosaic.version = 11 : i64} {
  func.func @_conv1x1_kernel(%arg0: i32, %arg1: memref<64x32xf32, #tpu.memory_space<vmem>>, %arg2: memref<32x128xf32, #tpu.memory_space<vmem>>, %arg3: memref<1x128xf32, #tpu.memory_space<vmem>>, %arg4: memref<64x128xf32, #tpu.memory_space<vmem>>) attributes {dimension_semantics = [#tpu.dimension_semantics<parallel>], iteration_bounds = array<i64: 2>, scalar_prefetch = 0 : i64, scratch_operands = 0 : i64, tpu.core_type = #tpu.core_type<tc>, window_params = [{transform_indices = @transform_0, window_bounds = array<i64: 64, 32>}, {pipeline_mode = #tpu.pipeline_mode<synchronous>, transform_indices = @transform_1, window_bounds = array<i64: 32, 128>}, {pipeline_mode = #tpu.pipeline_mode<synchronous>, transform_indices = @transform_2, window_bounds = array<i64: 1, 128>}, {transform_indices = @transform_3, window_bounds = array<i64: 64, 128>}]} {
    %c0 = arith.constant 0 : index
    %c0_0 = arith.constant 0 : index
    %0 = vector.load %arg1[%c0, %c0_0] : memref<64x32xf32, #tpu.memory_space<vmem>>, vector<64x32xf32>
    %c0_1 = arith.constant 0 : index
    %c0_2 = arith.constant 0 : index
    %1 = vector.load %arg2[%c0_1, %c0_2] : memref<32x128xf32, #tpu.memory_space<vmem>>, vector<32x128xf32>
    %cst = arith.constant dense<0.000000e+00> : vector<64x128xf32>
    %2 = tpu.matmul %0, %1, %cst {dimension_numbers = #tpu.dot_dimension_numbers<[1], [0], [0], [1], [0, 0, 1, 1], [], []>} : vector<64x32xf32>, vector<32x128xf32>, vector<64x128xf32> -> vector<64x128xf32>
    %c0_3 = arith.constant 0 : index
    %c0_4 = arith.constant 0 : index
    %3 = vector.load %arg3[%c0_3, %c0_4] : memref<1x128xf32, #tpu.memory_space<vmem>>, vector<1x128xf32>
    %4 = vector.broadcast %3 : vector<1x128xf32> to vector<64x128xf32>
    %5 = arith.addf %2, %4 : vector<64x128xf32>
    %c0_5 = arith.constant 0 : index
    %c0_6 = arith.constant 0 : index
    %6 = vector.load %arg4[%c0_5, %c0_6] : memref<64x128xf32, #tpu.memory_space<vmem>>, vector<64x128xf32>
    tpu.vector_store %arg4[%c0_5, %c0_6], %5 {strides = array<i32>} : memref<64x128xf32, #tpu.memory_space<vmem>>, vector<64x128xf32>,
    return
  }
  func.func @transform_0(%arg0: i32) -> (i32, i32) {
    %c0_i32 = arith.constant 0 : i32
    %c0_i32_0 = arith.constant 0 : i32
    return %arg0, %c0_i32 : i32, i32
  }
  func.func @transform_1(%arg0: i32) -> (i32, i32) {
    %c0_i32 = arith.constant 0 : i32
    %c0_i32_0 = arith.constant 0 : i32
    %c0_i32_1 = arith.constant 0 : i32
    return %c0_i32, %c0_i32_0 : i32, i32
  }
  func.func @transform_2(%arg0: i32) -> (i32, i32) {
    %c0_i32 = arith.constant 0 : i32
    %c0_i32_0 = arith.constant 0 : i32
    %c0_i32_1 = arith.constant 0 : i32
    return %c0_i32, %c0_i32_0 : i32, i32
  }
  func.func @transform_3(%arg0: i32) -> (i32, i32) {
    %c0_i32 = arith.constant 0 : i32
    %c0_i32_0 = arith.constant 0 : i32
    return %arg0, %c0_i32 : i32, i32
  }
}

</mosaic_0001>

<bundles_post_ra>
// kernel: tpu_custom_call.1
= control target key start
LH: loop header
LB: loop body
LE: loop exit
PB: predicated region body
PF: predicated region fallthrough
CT: control target
= control target key end

     0   :  { %8 = vsyncpa [#allocation3], 0  ;;  %s728_s0 = inlined_call_operand.vmem [shape: f32[128,32], index: 0, kind: input, shape index: {}]   ;;  %s729_s1 = inlined_call_operand.vmem [shape: f32[32,128], index: 1, kind: input, shape index: {}]   ;;  %s730_s2 = inlined_call_operand.vmem [shape: f32[1,128], index: 2, kind: input, shape index: {}]   ;;  %s731_s3 = inlined_call_operand.hbm [shape: f32[128,128], index: 3, kind: output, shape index: {}]  }
   0x1   :  { %10 = vsyncpa [#allocation3 + $0x1], 0  ;;  %s599_s12 = smov 0   ;;  %s601_s13 = smov 0  }
   0x2   :  { %s603_s14 = smov 0   ;;  %s605_s15 = smov 0  }
   0x3 LB: > { %s620_s16 = sadd.s32 4294967295, %s574_s15   ;;  %s405_s17 = sadd.s32 4294967294, %s574_s15   ;;  %s574_s15 = sphi %s605_s15, %s737_s15   ;;  %s570_s14 = sphi %s603_s14, %s736_s14   ;;  %s566_s13 = sphi %s601_s13, %s735_s13   ;;  %s562_s12 = sphi %s599_s12, %s734_s12  }
   0x4   : > { %s624_s18 = sadd.s32 1, %s574_s15   ;;  %s91_s19 = sadd.s32 1, %s570_s14 }
   0x5   : > { %s88_s20 = ssub.s32 %s574_s15, %s624_s18  ;;  %p101_p0 = scmp.ne.s32.totalorder %s570_s14, %s566_s13 }
   0x6   : > { %p89_p1 = scmp.eq.s32.totalorder %s88_s20, 0  ;;  %p102_p2 = scmp.eq.s32.totalorder %s620_s16, 1 }
   0x7   : > { %p107_p3 = scmp.ne.s32.totalorder %s566_s13, %s562_s12  ;;  %p108_p4 = scmp.eq.s32.totalorder %s405_s17, 1 }
   0x8   : > { %s635_s21 = scalar_select %p89_p1, %s570_s14, %s91_s19  }
   0x9   : > { %p637_p5 = por %p102_p2, %p101_p0  ;;  %p641_p6 = por %p108_p4, %p107_p3 }
   0xa   : > { %p408_p7 = scmp.ge.s32.totalorder %s574_s15, 1  ;;  %p141_p8 = scmp.lt.s32.totalorder %s574_s15, 3 }
   0xc   : > { %p142_p9 = pnand %p408_p7, %p141_p8 }
   0xd   : > { %v180_v0 = vld [vmem:[%s729_s1] sm:$0xff] (!%p142_p9)  ;;  %v181_v1 = vld [vmem:[%s729_s1 + $0x8] sm:$0xff] (!%p142_p9)  ;;  %v182_v2 = vld [vmem:[%s729_s1 + $0x10] sm:$0xff] (!%p142_p9)  ;;  %s410_s30 = sshll.u32 (!%p142_p9), %s620_s16, 3  ;;  %vm191_vm0 = vcmask (!%p142_p9), 261120   ;;  %s162_s10 = sand.u32 (!%p142_p9), 1, %s566_s13  }
   0xe   : > { %145 = sbr.rel (%p142_p9) target bundleno = 261 (0x105), region = 32  ;;  %v459_v3 = vpack.c.bf16 (!%p142_p9), %v181_v1, %v180_v0  ;;  %v183_v4 = vld [vmem:[%s729_s1 + $0x18] sm:$0xff] (!%p142_p9)  ;;  %p166_p10 = scmp.lt.s32.totalorder (!%p142_p9), %s410_s30, 15  ;;  %v412_v14 = vld [vmem:[%s730_s2] ss:$0 sm:$0xff] (!%p142_p9) }
   0xf   : > { %v463_v5 = vpack.c.bf16 (!%p142_p9), %v183_v4, %v182_v2  ;;  %s409_s11 = sshll.u32 (!%p142_p9), %s162_s10, 6  ;;  %s426_s20 = sshll.u32 (!%p142_p9), %s620_s16, 10 }
  0x10   : > { %460 = vmatprep.subr.bf16.mxu0 (!%p142_p9), %v459_v3  ;;  %467 = vmatprep.subr.bf16.mxu1 (!%p142_p9), %v459_v3  ;;  %s164_s24 = scalar_lea.vmem (!%p142_p9), [#allocation2], %s409_s11  ;;  %s681_s28 = scalar_lea.hbm (!%p142_p9), %s731_s3, %s426_s20 }
  0x11   : > { %462 = vmatpush3.bf16.msra.mxu0 (!%p142_p9), %v459_v3  ;;  %469 = vmatpush3.bf16.msra.mxu1 (!%p142_p9), %v459_v3  ;;  %s343_s25 = sshll.u32 (!%p142_p9), %s164_s24, 4  ;;  %s687_s16 = scalar_lea.sflag (!%p142_p9), [#allocation3], %s162_s10  ;;  %s683_s25 = int_to_ptr.vmem [resolvable:$true] %s343_s25 }
  0x12   : > { %464 = vmatprep.subr.bf16.mxu0 (!%p142_p9), %v463_v5  ;;  %468 = vmatprep.subr.bf16.mxu1 (!%p142_p9), %v463_v5  ;;  %s512_s29 = scalar_lea.vmem (!%p142_p9), %s683_s25, 1024 }
  0x13   : > { %p513_p11 = scmp.ne.s32.totalorder (!%p142_p9), %s683_s25, %s512_s29 }
  0x15   : > { %s739_s30 = smov (!%p166_p10, %s410_s30), 15  ;;  %466 = vmatpush3.bf16.msra.mxu0 %v463_v5  ;;  %470 = vmatpush3.bf16.msra.mxu1 %v463_v5  ;;  %p514_p12 = pnand %p513_p11, %p637_p5 }
  0x16   : > { %s411_s6 = sshll.u32 %s739_s30, 3  ;;  %s576_s30 = smov [#allocation2]  }
  0x17   : > { %s169_s9 = scalar_lea.vmem %s728_s0, %s411_s6  ;;  %p515_p13 = pneg %p514_p12 }
  0x18   : > { %v172_v6 = vld [vmem:[%s169_s9] sm:$0xff]  ;;  %v173_v8 = vld [vmem:[%s169_s9 + $0x8] sm:$0xff]  ;;  %v174_v10 = vld [vmem:[%s169_s9 + $0x10] sm:$0xff]  ;;  %s516_s4 = sshll.u32 %s576_s30, 4  ;;  %s517_s4 = int_to_ptr.vmem [resolvable:$false] %s516_s4 }
  0x19   : > { %v176_v7 = vld [vmem:[%s169_s9 + $0x20] sm:$0xff]  ;;  %v177_v9 = vld [vmem:[%s169_s9 + $0x28] sm:$0xff]  ;;  %447 = vmatprep.mubr.msk.f32.mxu0 %vm191_vm0, %v172_v6  ;;  %v178_v11 = vld [vmem:[%s169_s9 + $0x30] sm:$0xff]  ;;  %s518_s5 = scalar_lea.vmem %s517_s4, 2048  ;;  %p519_p0 = scmp.lt.s32.totalorder %s683_s25, %s517_s4 }
  0x1a   : > { %453 = vmatprep.mubr.msk.f32.mxu1 %vm191_vm0, %v176_v7  ;;  %448 = vmatmul.mubr.msk.f32.vlgmr.msra.gmra.mrb[0].mxu0 %vm191_vm0, %v173_v8  ;;  %v175_v12 = vld [vmem:[%s169_s9 + $0x18] sm:$0xff]  ;;  %p520_p1 = scmp.lt.s32.totalorder %s518_s5, %s512_s29 }
  0x1b   : > { %454 = vmatmul.mubr.msk.f32.vlgmr.msra.gmra.mrb[0].mxu1 %vm191_vm0, %v177_v9  ;;  %450 = vmatprep.mubr.msk.f32.mxu0 %vm191_vm0, %v174_v10  ;;  %v179_v13 = vld [vmem:[%s169_s9 + $0x38] sm:$0xff] }
  0x1c   : > { %456 = vmatprep.mubr.msk.f32.mxu1 %vm191_vm0, %v178_v11  ;;  %p521_p2 = por %p520_p1, %p519_p0 }
  0x1e   : > { %451 = vmatmul.mubr.msk.f32.gmra.mrb[2].mxu0 %vm191_vm0, %v175_v12  ;;  %p522_p3 = pnand %p521_p2, %p515_p13 }
  0x1f   : > { %457 = vmatmul.mubr.msk.f32.gmra.mrb[2].mxu1 %vm191_vm0, %v179_v13 }
  0xed   : > { %v449_v15 = vpop.f32.mrb[0].mxu0 }
  0xee   : > { %v455_v16 = vpop.f32.mrb[0].mxu1  ;;  %v288_v17 = vadd.f32 %v449_v15, %v412_v14  ;;  %v282_v19 = vpop.f32.mrb[1].mxu0 }
  0xef   : > { %v308_v18 = vadd.f32 %v455_v16, %v412_v14  ;;  %v302_v20 = vpop.f32.mrb[1].mxu1  ;;  %v283_v21 = vadd.f32 %v412_v14, %v282_v19 }
  0xf0   : > { %v303_v22 = vadd.f32 %v412_v14, %v302_v20  ;;  %322 = vst [vmem:[%s164_s24 + $0x8] sm:$0xff] %v288_v17 }
  0xf1   : > { %326 = vst [vmem:[%s164_s24 + $0x28] sm:$0xff] %v308_v18  ;;  %321 = vst [vmem:[%s164_s24] sm:$0xff] %v283_v21  ;;  %v452_v23 = vpop.f32.mrb[2].mxu0 }
  0xf2   : > { %325 = vst [vmem:[%s164_s24 + $0x20] sm:$0xff] %v303_v22  ;;  %v458_v24 = vpop.f32.mrb[2].mxu1  ;;  %v298_v25 = vadd.f32 %v452_v23, %v412_v14  ;;  %v292_v27 = vpop.f32.mrb[3].mxu0 }
  0xf3   : > { %v318_v26 = vadd.f32 %v458_v24, %v412_v14  ;;  %v312_v28 = vpop.f32.mrb[3].mxu1  ;;  %v293_v29 = vadd.f32 %v412_v14, %v292_v27 }
  0xf4   : > { %v313_v30 = vadd.f32 %v412_v14, %v312_v28  ;;  %324 = vst [vmem:[%s164_s24 + $0x18] sm:$0xff] %v298_v25 }
  0xf5   : > { %328 = vst [vmem:[%s164_s24 + $0x38] sm:$0xff] %v318_v26  ;;  %323 = vst [vmem:[%s164_s24 + $0x10] sm:$0xff] %v293_v29 }
  0xf6   : > { %327 = vst [vmem:[%s164_s24 + $0x30] sm:$0xff] %v313_v30 }
  0xf7   : > { %525 = shalt.err (!%p522_p3)
}
  0xf8   : > { %s526_s6 = scalar_lea.hbm %s681_s28, 1024  ;;  %s530_s9 = scalar_lea.hbm %s731_s3, 2048 }
  0xf9   : > { %p527_p4 = scmp.ne.s32.totalorder %s681_s28, %s526_s6  ;;  %p531_p9 = scmp.lt.u32.totalorder %s681_s28, %s731_s3 }
  0xfa   : > { %p532_p10 = scmp.lt.u32.totalorder %s530_s9, %s526_s6  ;;  %p534_p12 = scmp.lt.u32.totalorder %s526_s6, %s681_s28 }
  0xfb   : > { %p528_p7 = pnand %p527_p4, %p637_p5 }
  0xfc   : > { %p533_p11 = por %p532_p10, %p531_p9 }
  0xfd   : > { %p529_p8 = pneg %p528_p7 }
  0xfe   : > { %p535_p13 = por %p534_p12, %p533_p11 }
 0x100   : > { %p536_p0 = pnand %p535_p13, %p529_p8 }
 0x102   : > { %539 = shalt.err (!%p536_p0)
}
 0x103   : > { %s577_s17 = smov 128   ;;  %s578_s19 = smov 8  }
 0x104   : > { %471 = dma.vmem_to_hbm [thread:$0]  (%p637_p5), %s683_s25, 1024, %s681_s28, %s687_s16, %s577_s17, %s577_s17, %s578_s19  }
 0x105 PF: > { %p477_p1 = scmp.ge.s32.totalorder %s574_s15, 2  ;;  %s358_s20 = sand.u32 1, %s562_s12  }
 0x106   : > { %s359_s24 = scalar_lea.sflag [#allocation3], %s358_s20 }
 0x107   : > { %p474_p2 = pnand %p477_p1, %p641_p6 }
 0x109   : > { %557 = dma.done.wait (!%p474_p2), %s359_s24, 1024  }
 0x10a   : > { %559 = vsyncadd (!%p474_p2), %s359_s24, 4294966272  ;;  %p13_p3 = scmp.ge.s32.totalorder %s624_s18, 4   ;;  %s734_s12 = smov %s566_s13 }
 0x10b   : > { %s735_s13 = smov %s570_s14  ;;  %s736_s14 = smov %s635_s21 }
 0x10c   : > { %s737_s15 = smov %s624_s18  ;;  %15 = sbr.rel (!%p13_p3) target bundleno = 3 (0x3), region = 67 }
 0x113   :  { %364 = vsyncpa [#allocation3], 1 }
 0x114   :  { %366 = vsyncpa [#allocation3 + $0x1], 1 }

</bundles_post_ra>
